<compile_context>
chip_gen: v5e
topology: v5e:2x2
jax: 0.10.0
libtpu: 0.0.40
codegen_flags: <defaults>
</compile_context>

<pallas_src>
import functools

import jax
import jax.numpy as jnp
from jax import lax
from jax.experimental import pallas as pl
from jax.experimental.pallas import tpu as pltpu


# Under v7x's 64 MiB physical VMEM, above v5e/v6e scoped defaults (16/32 MiB).
_VMEM_LIMIT_BYTES = 48 * 1024 * 1024


# ----------------------------------------------------------------------------
# Helpers
# ----------------------------------------------------------------------------
def _round_up(x, m):
    return ((x + m - 1) // m) * m


def _pick_tile(n_pad, target, min_blocks=1):
    """Largest multiple of 128 dividing n_pad that is <= target, keeping at
    least `min_blocks` blocks along the axis when possible (megacore on v7x)."""
    cap = max(128, min(target, n_pad // max(min_blocks, 1)))
    cap = min(cap, n_pad)
    t = (cap // 128) * 128
    while t >= 128:
        if n_pad % t == 0:
            return t
        t -= 128
    return n_pad  # n_pad is always a multiple of 128, so not reached


def _pad2(w, rows, cols):
    w = jnp.asarray(w, jnp.float32)
    return jnp.pad(w, ((0, rows - w.shape[0]), (0, cols - w.shape[1])))


# ----------------------------------------------------------------------------
# Kernel 1: single pass over f32 A -> (bf16 copy of A, d = rsqrt(rowsum(A)+1)).
# Fuses the degree computation with the f32->bf16 repack so A is read once.
# ----------------------------------------------------------------------------
def repack_degree_kernel(a_ref, abf_ref, d_ref, acc_ref):
    k = pl.program_id(1)

    @pl.when(k == 0)
    def _():
        acc_ref[...] = jnp.zeros_like(acc_ref)

    a = a_ref[...]
    abf_ref[...] = a.astype(jnp.bfloat16)            # exact for {0,1} adjacency
    acc_ref[...] += jnp.sum(a, axis=1, keepdims=True)

    @pl.when(k == pl.num_programs(1) - 1)
    def _():
        d_ref[...] = lax.rsqrt(acc_ref[...] + 1.0)   # deg(A + I)^(-1/2)


def repack_and_degree(a, *, bm, bk):
    n = a.shape[0]
    return pl.pallas_call(
        repack_degree_kernel,
        out_shape=(jax.ShapeDtypeStruct((n, n), jnp.bfloat16),
                   jax.ShapeDtypeStruct((n, 1), jnp.float32)),
        grid_spec=pltpu.PrefetchScalarGridSpec(
            num_scalar_prefetch=0,
            grid=(n // bm, n // bk),
            in_specs=[pl.BlockSpec((bm, bk), lambda i, k: (i, k))],
            out_specs=[pl.BlockSpec((bm, bk), lambda i, k: (i, k)),
                       pl.BlockSpec((bm, 1), lambda i, k: (i, 0))],
            scratch_shapes=[pltpu.VMEM((bm, 1), jnp.float32)],
        ),
        compiler_params=pltpu.CompilerParams(
            dimension_semantics=("parallel", "arbitrary"),
            vmem_limit_bytes=_VMEM_LIMIT_BYTES),
    )(a)


# ----------------------------------------------------------------------------
# Kernel 2: one full GNNLayer (option=1), row-tiled, reduction over graph dim.
# ----------------------------------------------------------------------------
def gnn_layer_kernel(a_ref, d_ref, xd_ref, xrow_ref, wcat_ref,
                     twl_ref, twh_ref, twi_ref, wm0_ref, wm1_ref, wm2_ref,
                     o_ref, acc_ref, *, bk, cout, cout_pad, inv_temp,
                     apply_log_softmax):
    k = pl.program_id(1)

    @pl.when(k == 0)
    def _():
        acc_ref[...] = jnp.zeros_like(acc_ref)

    # Steady state: bf16 A tile -> MXU against the VMEM-resident Xd = d * X.
    off = pl.multiple_of(k * bk, 128)
    xd_k = xd_ref[pl.ds(off, bk), :]
    acc_ref[...] += jnp.dot(a_ref[...].astype(jnp.float32), xd_k,
                            preferred_element_type=jnp.float32)

    # Fused epilogue, once per row tile.
    @pl.when(k == pl.num_programs(1) - 1)
    def _():
        cp = cout_pad
        d = d_ref[...]                                    # (bm, 1)
        xr = xrow_ref[...]                                # (bm, cin_p) raw X rows
        # rows of H_LP @ X = d * (A @ (d*X)) + d^2 * X  (identity term added once)
        xl = d * acc_ref[...] + (d * d) * xr

        w = wcat_ref[...]                                 # (cin_p, 3cp) = [W_L|W_H|W_I]
        z = jnp.dot(xl, w, preferred_element_type=jnp.float32)   # H_LP X [W_L|W_H|W_I]
        y = jnp.dot(xr, w, preferred_element_type=jnp.float32)   #      X [W_L|W_H|W_I]

        h_l = jnp.maximum(z[:, 0:cp], 0.0)                          # relu(H_LP X W_L)
        h_h = jnp.maximum(y[:, cp:2 * cp] - z[:, cp:2 * cp], 0.0)   # relu(H_HP X W_H)
        h_i = jnp.maximum(y[:, 2 * cp:3 * cp], 0.0)                 # relu(X W_I)

        g_l = jax.nn.sigmoid(jnp.dot(h_l, twl_ref[...],
                                     preferred_element_type=jnp.float32))  # (bm,1)
        g_h = jax.nn.sigmoid(jnp.dot(h_h, twh_ref[...],
                                     preferred_element_type=jnp.float32))
        g_i = jax.nn.sigmoid(jnp.dot(h_i, twi_ref[...],
                                     preferred_element_type=jnp.float32))

        # mixing logits ([g_L g_H g_I]/T) @ W_Mix, built from W_Mix rows (no
        # lane-offset slicing anywhere in the epilogue).
        pre = inv_temp * (g_l * wm0_ref[...] + g_h * wm1_ref[...] +
                          g_i * wm2_ref[...])                      # (bm, 3)
        m = jnp.max(pre, axis=1, keepdims=True)
        e = jnp.exp(pre - m)
        lane3 = lax.broadcasted_iota(jnp.int32, (1, 3), 1)
        e0 = jnp.sum(jnp.where(lane3 == 0, e, 0.0), axis=1, keepdims=True)
        e1 = jnp.sum(jnp.where(lane3 == 1, e, 0.0), axis=1, keepdims=True)
        e2 = jnp.sum(jnp.where(lane3 == 2, e, 0.0), axis=1, keepdims=True)
        inv_sum = 1.0 / (e0 + e1 + e2)

        h = (e0 * h_l + e1 * h_h + e2 * h_i) * inv_sum    # softmax-mixed branches
        h = jnp.maximum(h, 0.0)

        if apply_log_softmax:  # last layer: log_softmax over the real lanes only
            lane = lax.broadcasted_iota(jnp.int32, (1, cp), 1)
            valid = lane < cout
            mm = jnp.max(jnp.where(valid, h, -jnp.inf), axis=1, keepdims=True)
            s = h - mm
            lse = jnp.log(jnp.sum(jnp.where(valid, jnp.exp(s), 0.0),
                                  axis=1, keepdims=True))
            h = jnp.where(valid, s - lse, 0.0)

        o_ref[...] = h


def gnn_layer(x_p, xd, a_bf16, d, w_cat, tw_l, tw_h, tw_i, wm_rows, *,
              cout, cout_pad, temperature, apply_log_softmax, bm, bk):
    n_pad, cin_p = x_p.shape
    c3 = 3 * cout_pad
    wm0, wm1, wm2 = wm_rows
    kernel = functools.partial(
        gnn_layer_kernel, bk=bk, cout=cout, cout_pad=cout_pad,
        inv_temp=1.0 / float(temperature), apply_log_softmax=apply_log_softmax)
    return pl.pallas_call(
        kernel,
        out_shape=jax.ShapeDtypeStruct((n_pad, cout_pad), jnp.float32),
        grid_spec=pltpu.PrefetchScalarGridSpec(
            num_scalar_prefetch=0,
            grid=(n_pad // bm, n_pad // bk),
            in_specs=[
                pl.BlockSpec((bm, bk), lambda i, k: (i, k)),        # A tile (bf16)
                pl.BlockSpec((bm, 1), lambda i, k: (i, 0)),         # d, own rows
                pl.BlockSpec((n_pad, cin_p), lambda i, k: (0, 0)),  # Xd, VMEM-resident
                pl.BlockSpec((bm, cin_p), lambda i, k: (i, 0)),     # X, own rows
                pl.BlockSpec((cin_p, c3), lambda i, k: (0, 0)),     # [W_L|W_H|W_I]
                pl.BlockSpec((cout_pad, 1), lambda i, k: (0, 0)),   # tW_L
                pl.BlockSpec((cout_pad, 1), lambda i, k: (0, 0)),   # tW_H
                pl.BlockSpec((cout_pad, 1), lambda i, k: (0, 0)),   # tW_I
                pl.BlockSpec((1, 3), lambda i, k: (0, 0)),          # W_Mix row 0
                pl.BlockSpec((1, 3), lambda i, k: (0, 0)),          # W_Mix row 1
                pl.BlockSpec((1, 3), lambda i, k: (0, 0)),          # W_Mix row 2
            ],
            out_specs=pl.BlockSpec((bm, cout_pad), lambda i, k: (i, 0)),
            scratch_shapes=[pltpu.VMEM((bm, cin_p), jnp.float32)],
        ),
        compiler_params=pltpu.CompilerParams(
            dimension_semantics=("parallel", "arbitrary"),
            vmem_limit_bytes=_VMEM_LIMIT_BYTES),
    )(a_bf16, d, xd, x_p, w_cat, tw_l, tw_h, tw_i, wm0, wm1, wm2)


# ----------------------------------------------------------------------------
# Full forward (GNN.forward, option=1, eval mode)
# ----------------------------------------------------------------------------
def gnn_forward(x, a, layer_params, temperature=1.0, *, tm=512, tk=2048):
    # TODO(synk): dropout omitted — eval/inference semantics (identity), no RNG.
    n, _ = x.shape
    n_pad = _round_up(n, 128)
    x = jnp.pad(jnp.asarray(x, jnp.float32), ((0, n_pad - n), (0, 0)))
    a = jnp.pad(jnp.asarray(a, jnp.float32), ((0, n_pad - n), (0, n_pad - n)))

    bm = _pick_tile(n_pad, tm, min_blocks=2)   # keep >=2 row tiles for megacore
    bk = _pick_tile(n_pad, tk, min_blocks=1)

    # One pass over f32 A: bf16 repack (exact for {0,1} adjacency) + degrees.
    a_bf16, d = repack_and_degree(a, bm=bm, bk=bk)

    num_layers = len(layer_params)
    cout = layer_params[-1]["W_L"].shape[1]
    for li, p in enumerate(layer_params):
        cin_l, cout = p["W_L"].shape
        cin_p = _round_up(cin_l, 128)
        cout_p = _round_up(cout, 128)
        if x.shape[1] < cin_p:                 # lane-dense feature padding
            x = jnp.pad(x, ((0, 0), (0, cin_p - x.shape[1])))
        w_cat = jnp.concatenate([_pad2(p["W_L"], cin_p, cout_p),
                                 _pad2(p["W_H"], cin_p, cout_p),
                                 _pad2(p["W_I"], cin_p, cout_p)], axis=1)
        tw_l = _pad2(p["tW_L"], cout_p, 1)
        tw_h = _pad2(p["tW_H"], cout_p, 1)
        tw_i = _pad2(p["tW_I"], cout_p, 1)
        wm = jnp.asarray(p["W_Mix"], jnp.float32)
        wm_rows = (wm[0:1, :], wm[1:2, :], wm[2:3, :])
        xd = d * x                             # fold D^{-1/2} into X, once per layer
        x = gnn_layer(x, xd, a_bf16, d, w_cat, tw_l, tw_h, tw_i, wm_rows,
                      cout=cout, cout_pad=cout_p, temperature=temperature,
                      apply_log_softmax=(li == num_layers - 1), bm=bm, bk=bk)
    return x[:n, :cout]


# ----------------------------------------------------------------------------
# Deterministic parameter init (mirrors GNN.__init__ shapes)
# ----------------------------------------------------------------------------
def init_layer_params(key, cin, cout):
    ks = jax.random.split(key, 7)
    return dict(
        W_L=jax.random.normal(ks[0], (cin, cout), jnp.float32),
        W_H=jax.random.normal(ks[1], (cin, cout), jnp.float32),
        W_I=jax.random.normal(ks[2], (cin, cout), jnp.float32),
        tW_L=jax.random.normal(ks[3], (cout, 1), jnp.float32),
        tW_H=jax.random.normal(ks[4], (cout, 1), jnp.float32),
        tW_I=jax.random.normal(ks[5], (cout, 1), jnp.float32),
        W_Mix=jax.random.normal(ks[6], (3, 3), jnp.float32),
    )


def init_gnn_params(key, cin, chid, cout, num_layers):
    keys = jax.random.split(key, num_layers)
    params = []
    for i in range(num_layers):
        if i == 0:
            a, b = cin, (chid if num_layers > 1 else cout)
        elif i == num_layers - 1:
            a, b = chid, cout
        else:
            a, b = chid, chid
        params.append(init_layer_params(keys[i], a, b))
    return params


# ----------------------------------------------------------------------------
# Pure-JAX reference (faithful port of the PyTorch forward, option=1, eval)
# ----------------------------------------------------------------------------
def _layer_ref(x, a, p, T):
    n = a.shape[0]
    eye = jnp.eye(n, dtype=jnp.float32)
    tA = a + eye
    d = 1.0 / jnp.sqrt(jnp.sum(tA, axis=1))
    D = jnp.diag(d)
    H_LP = D @ tA @ D
    H_HP = eye - H_LP
    H_L = jax.nn.relu(H_LP @ x @ p["W_L"])
    H_H = jax.nn.relu(H_HP @ x @ p["W_H"])
    H_I = jax.nn.relu(x @ p["W_I"])
    tL = jax.nn.sigmoid(H_L @ p["tW_L"])
    tH = jax.nn.sigmoid(H_H @ p["tW_H"])
    tI = jax.nn.sigmoid(H_I @ p["tW_I"])
    alpha = jax.nn.softmax(
        (jnp.concatenate([tL, tH, tI], axis=1) / T) @ p["W_Mix"], axis=1)
    H = alpha[:, 0:1] * H_L + alpha[:, 1:2] * H_H + alpha[:, 2:3] * H_I
    return jax.nn.relu(H)


def _gnn_ref(x, a, layer_params, T=1.0):
    for p in layer_params:
        x = _layer_ref(x, a, p, T)
    return jax.nn.log_softmax(x, axis=1)


# ----------------------------------------------------------------------------
if __name__ == "__main__":
    key = jax.random.PRNGKey(0)

    def make_graph(k, n):
        r = jax.random.uniform(k, (n, n))
        adj = (r + r.T > 1.0).astype(jnp.float32)
        return adj * (1.0 - jnp.eye(n, dtype=jnp.float32))

    # --- Test 1: tiny graph (single-tile path): N=8, in=4, hid=32, out=8, L=2 ---
    N, C_IN, C_HID, C_OUT, L = 8, 4, 32, 8, 2
    kx, ka, kp, kx2, ka2, kp2 = jax.random.split(key, 6)
    x = jax.random.normal(kx, (N, C_IN), jnp.float32)
    adj = make_graph(ka, N)
    params = init_gnn_params(kp, C_IN, C_HID, C_OUT, L)

    out = jax.block_until_ready(gnn_forward(x, adj, params, temperature=1.0))
    assert out.shape == (N, C_OUT)

    # --- Test 2: modest graph exercising the tiled path (grid = (2, 2)) ---
    N2 = 256
    x2 = jax.random.normal(kx2, (N2, C_IN), jnp.float32)
    adj2 = make_graph(ka2, N2)
    params2 = init_gnn_params(kp2, C_IN, C_HID, C_OUT, L)
    out2 = jax.block_until_ready(
        gnn_forward(x2, adj2, params2, temperature=1.0, tm=128, tk=128))
    assert out2.shape == (N2, C_OUT)

    # References at full f32 matmul precision.
    with jax.default_matmul_precision("highest"):
        ref = jax.block_until_ready(_gnn_ref(x, adj, params, T=1.0))
        ref2 = jax.block_until_ready(_gnn_ref(x2, adj2, params2, T=1.0))

    assert jnp.allclose(out, ref, rtol=1e-3, atol=1e-3), (
        f"max abs err {jnp.max(jnp.abs(out - ref))}")
    assert jnp.allclose(out2, ref2, rtol=1e-3, atol=1e-3), (
        f"max abs err {jnp.max(jnp.abs(out2 - ref2))}")

    print("KERNEL_OK")
</pallas_src>

<mosaic_0001>
module attributes {stable_mosaic.version = 11 : i64} {
  func.func @repack_degree_kernel(%arg0: i32, %arg1: i32, %arg2: memref<128x128xf32, #tpu.memory_space<vmem>>, %arg3: memref<128x128xbf16, #tpu.memory_space<vmem>>, %arg4: memref<128x1xf32, #tpu.memory_space<vmem>>, %arg5: memref<128x1xf32, #tpu.memory_space<vmem>>) attributes {dimension_semantics = [#tpu.dimension_semantics<parallel>, #tpu.dimension_semantics<arbitrary>], iteration_bounds = array<i64: 1, 1>, scalar_prefetch = 0 : i64, scratch_operands = 1 : i64, tpu.core_type = #tpu.core_type<tc>, window_params = [{transform_indices = @transform_0, window_bounds = array<i64: 128, 128>}, {transform_indices = @transform_1, window_bounds = array<i64: 128, 128>}, {transform_indices = @transform_2, window_bounds = array<i64: 128, 1>}]} {
    %c0_i32 = arith.constant 0 : i32
    %0 = arith.cmpi eq, %arg1, %c0_i32 : i32
    %1 = arith.extui %0 : i1 to i32
    %c0_i32_0 = arith.constant 0 : i32
    %2 = arith.cmpi ne, %1, %c0_i32_0 : i32
    scf.if %2 {
      %cst_10 = arith.constant 0.000000e+00 : f32
      %14 = vector.broadcast %cst_10 : f32 to vector<128x1xf32>
      %c0_11 = arith.constant 0 : index
      %c0_12 = arith.constant 0 : index
      %15 = vector.load %arg5[%c0_11, %c0_12] : memref<128x1xf32, #tpu.memory_space<vmem>>, vector<128x1xf32>
      tpu.vector_store %arg5[%c0_11, %c0_12], %14 {strides = array<i32>} : memref<128x1xf32, #tpu.memory_space<vmem>>, vector<128x1xf32>,
    } else {
    }
    %c0 = arith.constant 0 : index
    %c0_1 = arith.constant 0 : index
    %3 = vector.load %arg2[%c0, %c0_1] : memref<128x128xf32, #tpu.memory_space<vmem>>, vector<128x128xf32>
    %4 = arith.truncf %3 : vector<128x128xf32> to vector<128x128xbf16>
    %c0_2 = arith.constant 0 : index
    %c0_3 = arith.constant 0 : index
    %5 = vector.load %arg3[%c0_2, %c0_3] : memref<128x128xbf16, #tpu.memory_space<vmem>>, vector<128x128xbf16>
    tpu.vector_store %arg3[%c0_2, %c0_3], %4 {strides = array<i32>} : memref<128x128xbf16, #tpu.memory_space<vmem>>, vector<128x128xbf16>,
    %c0_4 = arith.constant 0 : index
    %c0_5 = arith.constant 0 : index
    %6 = vector.load %arg5[%c0_4, %c0_5] : memref<128x1xf32, #tpu.memory_space<vmem>>, vector<128x1xf32>
    %cst = arith.constant dense<0.000000e+00> : vector<128xf32>
    %7 = vector.multi_reduction <add>, %3, %cst [1] : vector<128x128xf32> to vector<128xf32>
    %8 = vector.shape_cast %7 : vector<128xf32> to vector<128x1xf32>
    %9 = arith.addf %6, %8 : vector<128x1xf32>
    %c0_6 = arith.constant 0 : index
    %c0_7 = arith.constant 0 : index
    %10 = vector.load %arg5[%c0_6, %c0_7] : memref<128x1xf32, #tpu.memory_space<vmem>>, vector<128x1xf32>
    tpu.vector_store %arg5[%c0_6, %c0_7], %9 {strides = array<i32>} : memref<128x1xf32, #tpu.memory_space<vmem>>, vector<128x1xf32>,
    %c0_i32_8 = arith.constant 0 : i32
    %11 = arith.cmpi eq, %arg1, %c0_i32_8 : i32
    %12 = arith.extui %11 : i1 to i32
    %c0_i32_9 = arith.constant 0 : i32
    %13 = arith.cmpi ne, %12, %c0_i32_9 : i32
    scf.if %13 {
      %c0_10 = arith.constant 0 : index
      %c0_11 = arith.constant 0 : index
      %14 = vector.load %arg5[%c0_10, %c0_11] : memref<128x1xf32, #tpu.memory_space<vmem>>, vector<128x1xf32>
      %cst_12 = arith.constant 1.000000e+00 : f32
      %15 = vector.broadcast %cst_12 : f32 to vector<128x1xf32>
      %16 = arith.addf %14, %15 : vector<128x1xf32>
      %17 = math.rsqrt %16 : vector<128x1xf32>
      %c0_13 = arith.constant 0 : index
      %c0_14 = arith.constant 0 : index
      %18 = vector.load %arg4[%c0_13, %c0_14] : memref<128x1xf32, #tpu.memory_space<vmem>>, vector<128x1xf32>
      tpu.vector_store %arg4[%c0_13, %c0_14], %17 {strides = array<i32>} : memref<128x1xf32, #tpu.memory_space<vmem>>, vector<128x1xf32>,
    } else {
    }
    return
  }
  func.func @transform_0(%arg0: i32, %arg1: i32) -> (i32, i32) {
    %c0_i32 = arith.constant 0 : i32
    return %arg0, %arg1 : i32, i32
  }
  func.func @transform_1(%arg0: i32, %arg1: i32) -> (i32, i32) {
    %c0_i32 = arith.constant 0 : i32
    return %arg0, %arg1 : i32, i32
  }
  func.func @transform_2(%arg0: i32, %arg1: i32) -> (i32, i32) {
    %c0_i32 = arith.constant 0 : i32
    %c0_i32_0 = arith.constant 0 : i32
    return %arg0, %c0_i32 : i32, i32
  }
}

</mosaic_0001>

<bundles_post_ra>
// kernel: tpu_custom_call.1
= control target key start
LH: loop header
LB: loop body
LE: loop exit
PB: predicated region body
PF: predicated region fallthrough
CT: control target
= control target key end

     0   :  { %8 = vsyncpa [#allocation4], 0  ;;  %s841_s0 = inlined_call_operand.hbm [shape: f32[128,128], index: 0, kind: input, shape index: {}]   ;;  %s842_s1 = inlined_call_operand.hbm [shape: bf16[128,128], index: 1, kind: output, shape index: {0}]   ;;  %s843_s2 = inlined_call_operand.vmem [shape: f32[128,1], index: 2, kind: output, shape index: {1}]  }
   0x1   :  { %9 = vsyncpa [#allocation5], 0  ;;  %s14_s11 = sshll.u32 %s841_s0, 4  ;;  %s549_s12 = smov [#allocation3]   ;;  %s15_s11 = int_to_ptr.hbm [resolvable:$true] %s14_s11 }
   0x2   :  { %s16_s13 = sshll.u32 %s549_s12, 4  ;;  %s550_s14 = smov 128   ;;  %s17_s13 = int_to_ptr.vmem [resolvable:$true] %s16_s13 }
   0x3   :  { %s551_s15 = smov 8  }
   0x4   :  { %22 = dma.hbm_to_vmem [thread:$0]  %s15_s11, 2048, %s17_s13, [#allocation4], %s550_s14, %s550_s14, %s551_s15  }
   0x5   :  { %545 = dma.done.wait [#allocation4], 2048  }
   0x6   :  { %546 = vsyncadd [#allocation4], 4294965248  ;;  %v52_v0 = vld [vmem:[#allocation3 + $0x20] sm:$0xff]  ;;  %v50_v1 = vld [vmem:[#allocation3 + $0x10] sm:$0xff]  ;;  %vm31_vm0 = vcmask 7168   ;;  %v552_v24 = vmov 0.0  }
   0x7   :  { %v48_v2 = vld [vmem:[#allocation3] sm:$0xff]  ;;  %120 = vadd.xlane.f32.xlu2 %v52_v0  ;;  %116 = vadd.xlane.f32.xlu1 %v50_v1  ;;  %v53_v3 = vld [vmem:[#allocation3 + $0x28] sm:$0xff]  ;;  %v51_v4 = vld [vmem:[#allocation3 + $0x18] sm:$0xff]  ;;  %36 = vst.msk [vmem:[#allocation2 + $0x20] sm:$0xff] %vm31_vm0, %v552_v24  ;;  %s394_s17 = sshll.u32 %s842_s1, 4  ;;  %s553_s18 = smov [#allocation6]   ;;  %s395_s17 = int_to_ptr.hbm [resolvable:$true] %s394_s17 }
   0x8   :  { %v49_v5 = vld [vmem:[#allocation3 + $0x8] sm:$0xff]  ;;  %112 = vadd.xlane.f32.xlu0 %v48_v2  ;;  %v424_v6 = vpack.c.bf16 %v53_v3, %v52_v0  ;;  %v419_v7 = vpack.c.bf16 %v51_v4, %v50_v1  ;;  %v55_v9 = vld [vmem:[#allocation3 + $0x38] sm:$0xff]  ;;  %v54_v10 = vld [vmem:[#allocation3 + $0x30] sm:$0xff]  ;;  %32 = vst.msk [vmem:[#allocation2] sm:$0xff] %vm31_vm0, %v552_v24  ;;  %s392_s19 = sshll.u32 %s553_s18, 4  ;;  %s554_s20 = smov 64   ;;  %s393_s19 = int_to_ptr.vmem [resolvable:$true] %s392_s19 }
   0x9   :  { %v414_v8 = vpack.c.bf16 %v49_v5, %v48_v2  ;;  %v429_v11 = vpack.c.bf16 %v55_v9, %v54_v10  ;;  %v59_v12 = vld [vmem:[#allocation3 + $0x58] sm:$0xff]  ;;  %v58_v13 = vld [vmem:[#allocation3 + $0x50] sm:$0xff]  ;;  %v56_v14 = vld [vmem:[#allocation3 + $0x40] sm:$0xff]  ;;  %33 = vst.msk [vmem:[#allocation2 + $0x8] sm:$0xff] %vm31_vm0, %v552_v24  ;;  %s555_s21 = smov 4  }
   0xa   :  { %452 = vst [vmem:[#allocation6 + $0x10] sm:$0xff] %v424_v6   ;;  %v439_v15 = vpack.c.bf16 %v59_v12, %v58_v13  ;;  %v57_v16 = vld [vmem:[#allocation3 + $0x48] sm:$0xff]  ;;  %v60_v19 = vld [vmem:[#allocation3 + $0x60] sm:$0xff]  ;;  %v62_v20 = vld [vmem:[#allocation3 + $0x70] sm:$0xff] }
   0xb   :  { %451 = vst [vmem:[#allocation6 + $0x8] sm:$0xff] %v419_v7   ;;  %v434_v17 = vpack.c.bf16 %v57_v16, %v56_v14  ;;  %v61_v18 = vld [vmem:[#allocation3 + $0x68] sm:$0xff]  ;;  %v63_v22 = vld [vmem:[#allocation3 + $0x78] sm:$0xff] }
   0xc   :  { %415 = vst [vmem:[#allocation6] sm:$0xff] %v414_v8   ;;  %v444_v21 = vpack.c.bf16 %v61_v18, %v60_v19  ;;  %v449_v23 = vpack.c.bf16 %v63_v22, %v62_v20 }
   0xd   :  { %453 = vst [vmem:[#allocation6 + $0x18] sm:$0xff] %v429_v11  }
   0xe   :  { %455 = vst [vmem:[#allocation6 + $0x28] sm:$0xff] %v439_v15   ;;  %v100_v25 = vld [vmem:[#allocation2 + $0x20] sm:$0xff] }
   0xf   :  { %122 = vadd.xlane.f32.xlu2 %v53_v3  ;;  %118 = vadd.xlane.f32.xlu1 %v51_v4  ;;  %454 = vst [vmem:[#allocation6 + $0x20] sm:$0xff] %v434_v17   ;;  %v96_v27 = vld [vmem:[#allocation2] sm:$0xff] }
  0x10   :  { %114 = vadd.xlane.f32.xlu0 %v49_v5  ;;  %456 = vst [vmem:[#allocation6 + $0x30] sm:$0xff] %v444_v21   ;;  %v97_v36 = vld [vmem:[#allocation2 + $0x8] sm:$0xff] }
  0x11   :  { %457 = vst [vmem:[#allocation6 + $0x38] sm:$0xff] %v449_v23  }
  0x12   :  { %34 = vst.msk [vmem:[#allocation2 + $0x10] sm:$0xff] %vm31_vm0, %v552_v24  ;;  %400 = dma.vmem_to_hbm [thread:$0]  %s393_s19, 1024, %s395_s17, [#allocation5], %s554_s20, %s554_s20, %s555_s21  }
  0x13   :  { %35 = vst.msk [vmem:[#allocation2 + $0x18] sm:$0xff] %vm31_vm0, %v552_v24 }
  0x14   :  { %37 = vst.msk [vmem:[#allocation2 + $0x28] sm:$0xff] %vm31_vm0, %v552_v24 }
  0x15   :  { %38 = vst.msk [vmem:[#allocation2 + $0x30] sm:$0xff] %vm31_vm0, %v552_v24 }
  0x16   :  { %39 = vst.msk [vmem:[#allocation2 + $0x38] sm:$0xff] %vm31_vm0, %v552_v24 }
  0x17   :  { %128 = vadd.xlane.f32.xlu2 %v56_v14  ;;  %126 = vadd.xlane.f32.xlu1 %v55_v9  ;;  %40 = vst.msk [vmem:[#allocation2 + $0x40] sm:$0xff] %vm31_vm0, %v552_v24 }
  0x18   :  { %124 = vadd.xlane.f32.xlu0 %v54_v10  ;;  %41 = vst.msk [vmem:[#allocation2 + $0x48] sm:$0xff] %vm31_vm0, %v552_v24 }
  0x19   :  { %42 = vst.msk [vmem:[#allocation2 + $0x50] sm:$0xff] %vm31_vm0, %v552_v24  ;;  %v98_v26 = vld [vmem:[#allocation2 + $0x10] sm:$0xff] }
  0x1a   :  { %43 = vst.msk [vmem:[#allocation2 + $0x58] sm:$0xff] %vm31_vm0, %v552_v24  ;;  %v99_v35 = vld [vmem:[#allocation2 + $0x18] sm:$0xff] }
  0x1b   :  { %44 = vst.msk [vmem:[#allocation2 + $0x60] sm:$0xff] %vm31_vm0, %v552_v24  ;;  %v101_v34 = vld [vmem:[#allocation2 + $0x28] sm:$0xff] }
  0x1c   :  { %45 = vst.msk [vmem:[#allocation2 + $0x68] sm:$0xff] %vm31_vm0, %v552_v24  ;;  %v102_v51 = vld [vmem:[#allocation2 + $0x30] sm:$0xff] }
  0x1d   :  { %46 = vst.msk [vmem:[#allocation2 + $0x70] sm:$0xff] %vm31_vm0, %v552_v24  ;;  %v103_v50 = vld [vmem:[#allocation2 + $0x38] sm:$0xff] }
  0x1e   :  { %47 = vst.msk [vmem:[#allocation2 + $0x78] sm:$0xff] %vm31_vm0, %v552_v24  ;;  %v104_v49 = vld [vmem:[#allocation2 + $0x40] sm:$0xff] }
  0x1f   :  { %134 = vadd.xlane.f32.xlu2 %v59_v12  ;;  %132 = vadd.xlane.f32.xlu1 %v58_v13  ;;  %v105_v10 = vld [vmem:[#allocation2 + $0x48] sm:$0xff] }
  0x20   :  { %130 = vadd.xlane.f32.xlu0 %v57_v16  ;;  %v106_v9 = vld [vmem:[#allocation2 + $0x50] sm:$0xff] }
  0x21   :  { %v107_v6 = vld [vmem:[#allocation2 + $0x58] sm:$0xff] }
  0x27   :  { %140 = vadd.xlane.f32.xlu2 %v62_v20  ;;  %138 = vadd.xlane.f32.xlu1 %v61_v18 }
  0x28   :  { %136 = vadd.xlane.f32.xlu0 %v60_v19 }
  0x30   :  { %142 = vadd.xlane.f32.xlu0 %v63_v22 }
  0x7a   :  { %v121_v28 = vpop.xlane.xlu2 %120  ;;  %v117_v29 = vpop.xlane.xlu1 %116 }
  0x7b   :  { %v148_v30 = vadd.f32 %v121_v28, %v100_v25  ;;  %v146_v31 = vadd.f32 %v117_v29, %v98_v26  ;;  %v113_v32 = vpop.xlane.xlu0 %112 }
  0x7c   :  { %v144_v33 = vadd.f32 %v113_v32, %v96_v27 }
  0x7d   :  { %165 = vst.msk [vmem:[#allocation2 + $0x20] sm:$0xff] %vm31_vm0, %v148_v30 }
  0x7e   :  { %163 = vst.msk [vmem:[#allocation2 + $0x10] sm:$0xff] %vm31_vm0, %v146_v31 }
  0x7f   :  { %161 = vst.msk [vmem:[#allocation2] sm:$0xff] %vm31_vm0, %v144_v33 }
  0x82   :  { %v123_v37 = vpop.xlane.xlu2 %122  ;;  %v119_v38 = vpop.xlane.xlu1 %118 }
  0x83   :  { %v149_v39 = vadd.f32 %v123_v37, %v101_v34  ;;  %v147_v40 = vadd.f32 %v119_v38, %v99_v35  ;;  %v115_v41 = vpop.xlane.xlu0 %114 }
  0x84   :  { %v184_v42 = vld [vmem:[#allocation2 + $0x20] sm:$0xff]  ;;  %v145_v43 = vadd.f32 %v115_v41, %v97_v36 }
  0x85   :  { %v596_v44 = vadd.f32 1.0, %v184_v42  ;;  %v182_v45 = vld [vmem:[#allocation2 + $0x10] sm:$0xff]  ;;  %166 = vst.msk [vmem:[#allocation2 + $0x28] sm:$0xff] %vm31_vm0, %v149_v39 }
  0x86   :  { %v599_v46 = vadd.f32 1.0, %v182_v45  ;;  %v180_v47 = vld [vmem:[#allocation2] sm:$0xff]  ;;  %164 = vst.msk [vmem:[#allocation2 + $0x18] sm:$0xff] %vm31_vm0, %v147_v40  ;;  %v110_v42 = vld [vmem:[#allocation2 + $0x70] sm:$0xff] }
  0x87   :  { %465 = vrsqrt.f32 %v596_v44  ;;  %v603_v48 = vadd.f32 1.0, %v180_v47  ;;  %162 = vst.msk [vmem:[#allocation2 + $0x8] sm:$0xff] %vm31_vm0, %v145_v43  ;;  %vm258_vm1 = vweird.f32 %v596_v44 }
  0x88   :  { %467 = vrsqrt.f32 %v599_v46  ;;  %vm238_vm3 = vweird.f32 %v599_v46 }
  0x89   :  { %469 = vrsqrt.f32 %v603_v48  ;;  %vm218_vm7 = vweird.f32 %v603_v48 }
  0x8a   :  { %v129_v52 = vpop.xlane.xlu2 %128  ;;  %v127_v53 = vpop.xlane.xlu1 %126 }
  0x8b   :  { %v152_v54 = vadd.f32 %v129_v52, %v104_v49  ;;  %v151_v55 = vadd.f32 %v127_v53, %v103_v50  ;;  %v125_v56 = vpop.xlane.xlu0 %124  ;;  %v108_v49 = vld [vmem:[#allocation2 + $0x60] sm:$0xff] }
  0x8c   :  { %v185_v57 = vld [vmem:[#allocation2 + $0x28] sm:$0xff]  ;;  %v150_v58 = vadd.f32 %v125_v56, %v102_v51 }
  0x8d   :  { %v608_v59 = vpop.eup %465  ;;  %v610_v60 = vadd.f32 1.0, %v185_v57  ;;  %v183_v61 = vld [vmem:[#allocation2 + $0x18] sm:$0xff]  ;;  %169 = vst.msk [vmem:[#allocation2 + $0x40] sm:$0xff] %vm31_vm0, %v152_v54 }
  0x8e   :  { %v613_v62 = vpop.eup %467  ;;  %v253_v63 = vmul.f32 %v608_v59, %v596_v44  ;;  %v617_v0 = vadd.f32 1.0, %v183_v61  ;;  %v181_v1 = vld [vmem:[#allocation2 + $0x8] sm:$0xff]  ;;  %168 = vst.msk [vmem:[#allocation2 + $0x38] sm:$0xff] %vm31_vm0, %v151_v55  ;;  %vm259_vm2 = vweird.f32 %v608_v59 }
  0x8f   :  { %v620_v2 = vpop.eup %469  ;;  %v233_v3 = vmul.f32 %v613_v62, %v599_v46  ;;  %471 = vrsqrt.f32 %v610_v60  ;;  %167 = vst.msk [vmem:[#allocation2 + $0x30] sm:$0xff] %vm31_vm0, %v150_v58  ;;  %v631_v8 = vadd.f32 1.0, %v181_v1  ;;  %vm239_vm4 = vweird.f32 %v613_v62  ;;  %vm260_vm6 = vmor %vm258_vm1, %vm259_vm2 }
  0x90   :  { %v254_v4 = vmul.f32 %v608_v59, %v253_v63  ;;  %v213_v5 = vmul.f32 %v620_v2, %v603_v48  ;;  %473 = vrsqrt.f32 %v617_v0  ;;  %vm219_vm5 = vweird.f32 %v620_v2  ;;  %vm240_vm8 = vmor %vm238_vm3, %vm239_vm4  ;;  %v109_v48 = vld [vmem:[#allocation2 + $0x68] sm:$0xff] }
  0x91   :  { %v234_v7 = vmul.f32 %v613_v62, %v233_v3  ;;  %475 = vrsqrt.f32 %v631_v8  ;;  %vm268_vm9 = vweird.f32 %v610_v60  ;;  %vm220_vm10 = vmor %vm218_vm7, %vm219_vm5  ;;  %vm248_vm11 = vweird.f32 %v617_v0 }
  0x92   :  { %v255_v11 = vmul.f32 0.5, %v254_v4  ;;  %v214_v12 = vmul.f32 %v620_v2, %v213_v5  ;;  %v135_v13 = vpop.xlane.xlu2 %134  ;;  %v133_v14 = vpop.xlane.xlu1 %132  ;;  %vm228_vm2 = vweird.f32 %v631_v8 }
  0x93   :  { %v235_v15 = vmul.f32 0.5, %v234_v7  ;;  %v155_v16 = vadd.f32 %v135_v13, %v107_v6  ;;  %v131_v17 = vpop.xlane.xlu0 %130  ;;  %v154_v21 = vadd.f32 %v133_v14, %v106_v9 }
  0x94   :  { %v256_v18 = vsub.f32 1.5, %v255_v11  ;;  %v215_v19 = vmul.f32 0.5, %v214_v12  ;;  %v188_v20 = vld [vmem:[#allocation2 + $0x40] sm:$0xff]  ;;  %v153_v22 = vadd.f32 %v131_v17, %v105_v10 }
  0x95   :  { %v637_v23 = vpop.eup %471  ;;  %v236_v24 = vsub.f32 1.5, %v235_v15  ;;  %v641_v25 = vadd.f32 1.0, %v188_v20  ;;  %172 = vst.msk [vmem:[#allocation2 + $0x58] sm:$0xff] %vm31_vm0, %v155_v16  ;;  %v187_v30 = vld [vmem:[#allocation2 + $0x38] sm:$0xff] }
  0x96   :  { %v644_v26 = vpop.eup %473  ;;  %v257_v27 = vmul.f32 %v608_v59, %v256_v18  ;;  %v216_v28 = vsub.f32 1.5, %v215_v19  ;;  %v263_v29 = vmul.f32 %v637_v23, %v610_v60  ;;  %v186_v31 = vld [vmem:[#allocation2 + $0x30] sm:$0xff]  ;;  %171 = vst.msk [vmem:[#allocation2 + $0x50] sm:$0xff] %vm31_vm0, %v154_v21  ;;  %v679_v40 = vadd.f32 1.0, %v187_v30 }
  0x97   :  { %v237_v32 = vmul.f32 %v613_v62, %v236_v24  ;;  %v243_v33 = vmul.f32 %v644_v26, %v617_v0  ;;  %477 = vrsqrt.f32 %v641_v25  ;;  %170 = vst.msk [vmem:[#allocation2 + $0x48] sm:$0xff] %vm31_vm0, %v153_v22  ;;  %v669_v37 = vpop.eup %475  ;;  %v681_v41 = vadd.f32 1.0, %v186_v31  ;;  %v111_v0 = vld [vmem:[#allocation2 + $0x78] sm:$0xff] }
  0x98   :  { %v261_v34 = vsel %vm260_vm6, %v608_v59, %v257_v27  ;;  %v217_v35 = vmul.f32 %v620_v2, %v216_v28  ;;  %v264_v36 = vmul.f32 %v637_v23, %v263_v29  ;;  %v223_v45 = vmul.f32 %v669_v37, %v631_v8 }
  0x99   :  { %376 = vst.msk [vmem:[%s843_s2 + $0x20] sm:$0xff] %vm31_vm0, %v261_v34  ;;  %v241_v38 = vsel %vm240_vm8, %v613_v62, %v237_v32  ;;  %v244_v39 = vmul.f32 %v644_v26, %v243_v33  ;;  %vm269_vm12 = vweird.f32 %v637_v23  ;;  %vm249_vm13 = vweird.f32 %v644_v26 }
  0x9a   :  { %374 = vst.msk [vmem:[%s843_s2 + $0x10] sm:$0xff] %vm31_vm0, %v241_v38  ;;  %v221_v43 = vsel %vm220_vm10, %v620_v2, %v217_v35  ;;  %v265_v44 = vmul.f32 0.5, %v264_v36  ;;  %v141_v46 = vpop.xlane.xlu2 %140  ;;  %v139_v47 = vpop.xlane.xlu1 %138  ;;  %479 = vrsqrt.f32 %v679_v40  ;;  %v224_v53 = vmul.f32 %v669_v37, %v223_v45  ;;  %vm270_vm14 = vmor %vm268_vm9, %vm269_vm12 }
  0x9b   :  { %372 = vst.msk [vmem:[%s843_s2] sm:$0xff] %vm31_vm0, %v221_v43  ;;  %v245_v50 = vmul.f32 0.5, %v244_v39  ;;  %v137_v51 = vpop.xlane.xlu0 %136  ;;  %481 = vrsqrt.f32 %v681_v41  ;;  %v158_v55 = vadd.f32 %v141_v46, %v110_v42  ;;  %v157_v61 = vadd.f32 %v139_v47, %v109_v48  ;;  %vm250_vm1 = vmor %vm248_vm11, %vm249_vm13 }
  0x9c   :  { %v266_v52 = vsub.f32 1.5, %v265_v44  ;;  %v191_v54 = vld [vmem:[#allocation2 + $0x58] sm:$0xff]  ;;  %v156_v62 = vadd.f32 %v137_v51, %v108_v49  ;;  %v225_v1 = vmul.f32 0.5, %v224_v53  ;;  %vm229_vm15 = vweird.f32 %v669_v37 }
  0x9d   :  { %v700_v56 = vpop.eup %477  ;;  %v246_v57 = vsub.f32 1.5, %v245_v50  ;;  %v702_v58 = vadd.f32 1.0, %v191_v54  ;;  %v190_v59 = vld [vmem:[#allocation2 + $0x50] sm:$0xff]  ;;  %175 = vst.msk [vmem:[#allocation2 + $0x70] sm:$0xff] %vm31_vm0, %v158_v55  ;;  %vm230_vm3 = vmor %vm228_vm2, %vm229_vm15  ;;  %vm298_vm4 = vweird.f32 %v641_v25  ;;  %vm288_vm6 = vweird.f32 %v679_v40 }
  0x9e   :  { %v267_v63 = vmul.f32 %v637_v23, %v266_v52  ;;  %v293_v2 = vmul.f32 %v700_v56, %v641_v25  ;;  %v189_v3 = vld [vmem:[#allocation2 + $0x48] sm:$0xff]  ;;  %v715_v5 = vadd.f32 1.0, %v190_v59  ;;  %174 = vst.msk [vmem:[#allocation2 + $0x68] sm:$0xff] %vm31_vm0, %v157_v61  ;;  %v226_v7 = vsub.f32 1.5, %v225_v1 }
  0x9f   :  { %v247_v4 = vmul.f32 %v644_v26, %v246_v57  ;;  %483 = vrsqrt.f32 %v702_v58  ;;  %v724_v9 = vadd.f32 1.0, %v189_v3  ;;  %173 = vst.msk [vmem:[#allocation2 + $0x60] sm:$0xff] %vm31_vm0, %v156_v62  ;;  %vm299_vm5 = vweird.f32 %v700_v56 }
  0xa0   :  { %v271_v6 = vsel %vm270_vm14, %v637_v23, %v267_v63  ;;  %v294_v60 = vmul.f32 %v700_v56, %v293_v2  ;;  %v727_v10 = vpop.eup %479  ;;  %485 = vrsqrt.f32 %v715_v5  ;;  %v227_v13 = vmul.f32 %v669_v37, %v226_v7  ;;  %vm300_vm7 = vmor %vm298_vm4, %vm299_vm5 }
  0xa1   :  { %377 = vst.msk [vmem:[%s843_s2 + $0x28] sm:$0xff] %vm31_vm0, %v271_v6  ;;  %v251_v11 = vsel %vm250_vm1, %v644_v26, %v247_v4  ;;  %v735_v12 = vpop.eup %481  ;;  %v283_v15 = vmul.f32 %v727_v10, %v679_v40  ;;  %487 = vrsqrt.f32 %v724_v9  ;;  %vm289_vm8 = vweird.f32 %v727_v10 }
  0xa2   :  { %375 = vst.msk [vmem:[%s843_s2 + $0x18] sm:$0xff] %vm31_vm0, %v251_v11  ;;  %v295_v14 = vmul.f32 0.5, %v294_v60  ;;  %v273_v16 = vmul.f32 %v735_v12, %v681_v41  ;;  %v231_v18 = vsel %vm230_vm3, %v669_v37, %v227_v13  ;;  %vm278_vm9 = vweird.f32 %v681_v41  ;;  %vm290_vm11 = vmor %vm288_vm6, %vm289_vm8 }
  0xa3   :  { %v143_v17 = vpop.xlane.xlu0 %142  ;;  %v284_v19 = vmul.f32 %v727_v10, %v283_v15  ;;  %373 = vst.msk [vmem:[%s843_s2 + $0x8] sm:$0xff] %vm31_vm0, %v231_v18  ;;  %vm279_vm10 = vweird.f32 %v735_v12  ;;  %vm328_vm12 = vweird.f32 %v702_v58  ;;  %vm318_vm15 = vweird.f32 %v715_v5 }
  0xa4   :  { %v296_v8 = vsub.f32 1.5, %v295_v14  ;;  %v159_v20 = vadd.f32 %v143_v17, %v111_v0  ;;  %v274_v22 = vmul.f32 %v735_v12, %v273_v16  ;;  %v194_v23 = vld [vmem:[#allocation2 + $0x70] sm:$0xff]  ;;  %vm280_vm14 = vmor %vm278_vm9, %vm279_vm10  ;;  %vm308_vm5 = vweird.f32 %v724_v9 }
  0xa5   :  { %v484_v21 = vpop.eup %483  ;;  %v285_v26 = vmul.f32 0.5, %v284_v19  ;;  %v193_v28 = vld [vmem:[#allocation2 + $0x68] sm:$0xff]  ;;  %v768_v31 = vadd.f32 1.0, %v194_v23 }
  0xa6   :  { %v297_v24 = vmul.f32 %v700_v56, %v296_v8  ;;  %v323_v27 = vmul.f32 %v484_v21, %v702_v58  ;;  %176 = vst.msk [vmem:[#allocation2 + $0x78] sm:$0xff] %vm31_vm0, %v159_v20  ;;  %v486_v29 = vpop.eup %485  ;;  %v275_v30 = vmul.f32 0.5, %v274_v22  ;;  %v770_v32 = vadd.f32 1.0, %v193_v28  ;;  %v192_v44 = vld [vmem:[#allocation2 + $0x60] sm:$0xff] }
  0xa7   :  { %v286_v34 = vsub.f32 1.5, %v285_v26  ;;  %v313_v36 = vmul.f32 %v486_v29, %v715_v5  ;;  %v488_v37 = vpop.eup %487  ;;  %489 = vrsqrt.f32 %v768_v31  ;;  %vm329_vm13 = vweird.f32 %v484_v21 }
  0xa8   :  { %v301_v33 = vsel %vm300_vm7, %v700_v56, %v297_v24  ;;  %v324_v35 = vmul.f32 %v484_v21, %v323_v27  ;;  %v276_v25 = vsub.f32 1.5, %v275_v30  ;;  %v303_v43 = vmul.f32 %v488_v37, %v724_v9  ;;  %vm330_vm2 = vmor %vm328_vm12, %vm329_vm13 }
  0xa9   :  { %380 = vst.msk [vmem:[%s843_s2 + $0x40] sm:$0xff] %vm31_vm0, %v301_v33  ;;  %v287_v38 = vmul.f32 %v727_v10, %v286_v34  ;;  %v314_v42 = vmul.f32 %v486_v29, %v313_v36  ;;  %491 = vrsqrt.f32 %v770_v32  ;;  %vm319_vm1 = vweird.f32 %v486_v29 }
  0xaa   :  { %v325_v39 = vmul.f32 0.5, %v324_v35  ;;  %v277_v45 = vmul.f32 %v735_v12, %v276_v25  ;;  %v304_v48 = vmul.f32 %v488_v37, %v303_v43  ;;  %v208_v49 = vadd.f32 1.0, %v192_v44  ;;  %vm320_vm4 = vmor %vm318_vm15, %vm319_vm1 }
  0xab   :  { %v291_v41 = vsel %vm290_vm11, %v727_v10, %v287_v38  ;;  %v315_v47 = vmul.f32 0.5, %v314_v42  ;;  %vm309_vm3 = vweird.f32 %v488_v37  ;;  %vm358_vm7 = vweird.f32 %v768_v31 }
  0xac   :  { %v326_v46 = vsub.f32 1.5, %v325_v39  ;;  %379 = vst.msk [vmem:[%s843_s2 + $0x38] sm:$0xff] %vm31_vm0, %v291_v41  ;;  %v281_v40 = vsel %vm280_vm14, %v735_v12, %v277_v45  ;;  %v305_v53 = vmul.f32 0.5, %v304_v48  ;;  %493 = vrsqrt.f32 %v208_v49  ;;  %vm310_vm6 = vmor %vm308_vm5, %vm309_vm3 }
  0xad   :  { %v195_v50 = vld [vmem:[#allocation2 + $0x78] sm:$0xff]  ;;  %378 = vst.msk [vmem:[%s843_s2 + $0x30] sm:$0xff] %vm31_vm0, %v281_v40  ;;  %v316_v52 = vsub.f32 1.5, %v315_v47  ;;  %v490_v55 = vpop.eup %489  ;;  %vm348_vm9 = vweird.f32 %v770_v32  ;;  %vm338_vm14 = vweird.f32 %v208_v49 }
  0xae   :  { %v327_v51 = vmul.f32 %v484_v21, %v326_v46  ;;  %v211_v54 = vadd.f32 1.0, %v195_v50  ;;  %v306_v59 = vsub.f32 1.5, %v305_v53  ;;  %v353_v61 = vmul.f32 %v490_v55, %v768_v31 }
  0xaf   :  { %v317_v57 = vmul.f32 %v486_v29, %v316_v52  ;;  %v492_v62 = vpop.eup %491  ;;  %vm359_vm8 = vweird.f32 %v490_v55 }
  0xb0   :  { %v331_v56 = vsel %vm330_vm2, %v484_v21, %v327_v51  ;;  %495 = vrsqrt.f32 %v211_v54  ;;  %v307_v63 = vmul.f32 %v488_v37, %v306_v59  ;;  %v354_v1 = vmul.f32 %v490_v55, %v353_v61  ;;  %vm360_vm11 = vmor %vm358_vm7, %vm359_vm8 }
  0xb1   :  { %383 = vst.msk [vmem:[%s843_s2 + $0x58] sm:$0xff] %vm31_vm0, %v331_v56  ;;  %v321_v58 = vsel %vm320_vm4, %v486_v29, %v317_v57  ;;  %v343_v2 = vmul.f32 %v492_v62, %v770_v32  ;;  %vm349_vm10 = vweird.f32 %v492_v62  ;;  %vm368_vm2 = vweird.f32 %v211_v54 }
  0xb2   :  { %382 = vst.msk [vmem:[%s843_s2 + $0x50] sm:$0xff] %vm31_vm0, %v321_v58  ;;  %v311_v3 = vsel %vm310_vm6, %v488_v37, %v307_v63  ;;  %v355_v4 = vmul.f32 0.5, %v354_v1  ;;  %v494_v5 = vpop.eup %493  ;;  %vm350_vm12 = vmor %vm348_vm9, %vm349_vm10 }
  0xb3   :  { %v344_v6 = vmul.f32 %v492_v62, %v343_v2  ;;  %381 = vst.msk [vmem:[%s843_s2 + $0x48] sm:$0xff] %vm31_vm0, %v311_v3  ;;  %v333_v9 = vmul.f32 %v494_v5, %v208_v49  ;;  %vm339_vm13 = vweird.f32 %v494_v5 }
  0xb4   :  { %v356_v7 = vsub.f32 1.5, %v355_v4  ;;  %vm340_vm1 = vmor %vm338_vm14, %vm339_vm13 }
  0xb5   :  { %v345_v60 = vmul.f32 0.5, %v344_v6  ;;  %v334_v12 = vmul.f32 %v494_v5, %v333_v9 }
  0xb6   :  { %v496_v10 = vpop.eup %495  ;;  %v357_v11 = vmul.f32 %v490_v55, %v356_v7 }
  0xb7   :  { %v346_v0 = vsub.f32 1.5, %v345_v60  ;;  %v363_v13 = vmul.f32 %v496_v10, %v211_v54  ;;  %v335_v16 = vmul.f32 0.5, %v334_v12  ;;  %vm369_vm15 = vweird.f32 %v496_v10 }
  0xb8   :  { %v361_v14 = vsel %vm360_vm11, %v490_v55, %v357_v11  ;;  %vm370_vm3 = vmor %vm368_vm2, %vm369_vm15 }
  0xb9   :  { %v347_v15 = vmul.f32 %v492_v62, %v346_v0  ;;  %v364_v17 = vmul.f32 %v496_v10, %v363_v13  ;;  %386 = vst.msk [vmem:[%s843_s2 + $0x70] sm:$0xff] %vm31_vm0, %v361_v14  ;;  %v336_v8 = vsub.f32 1.5, %v335_v16 }
  0xbb   :  { %v351_v18 = vsel %vm350_vm12, %v492_v62, %v347_v15  ;;  %v365_v19 = vmul.f32 0.5, %v364_v17  ;;  %v337_v20 = vmul.f32 %v494_v5, %v336_v8 }
  0xbc   :  { %385 = vst.msk [vmem:[%s843_s2 + $0x68] sm:$0xff] %vm31_vm0, %v351_v18 }
  0xbd   :  { %v366_v21 = vsub.f32 1.5, %v365_v19  ;;  %v341_v22 = vsel %vm340_vm1, %v494_v5, %v337_v20 }
  0xbe   :  { %384 = vst.msk [vmem:[%s843_s2 + $0x60] sm:$0xff] %vm31_vm0, %v341_v22 }
  0xbf   :  { %v367_v23 = vmul.f32 %v496_v10, %v366_v21 }
  0xc1   :  { %v371_v24 = vsel %vm370_vm3, %v496_v10, %v367_v23 }
  0xc2   :  { %387 = vst.msk [vmem:[%s843_s2 + $0x78] sm:$0xff] %vm31_vm0, %v371_v24 }
  0xc3   :  { %547 = dma.done.wait [#allocation5], 1024  }
  0xc4   :  { %548 = vsyncadd [#allocation5], 4294966272 }
  0xc5   :  { %409 = vsyncpa [#allocation4], 1 }
  0xc6   :  { %410 = vsyncpa [#allocation5], 1 }

</bundles_post_ra>
